<compile_context>
chip_gen: v7x
topology: tpu7x:2x2x1
jax: 0.10.0
libtpu: 0.0.40
codegen_flags: <defaults>
</compile_context>

<pallas_src>
import math

import jax
import jax.numpy as jnp
from jax.experimental import pallas as pl
from jax.experimental.pallas import tpu as pltpu


def _cdiv(a, b):
    return -(-a // b)


def _round_up(a, b):
    return -(-a // b) * b


def _make_wmse_kernel(row_tile, rows, num_tiles):
    """Build the per-tile partial-sum kernel with static tiling baked in."""
    valid_last = rows - (num_tiles - 1) * row_tile
    needs_mask = valid_last != row_tile          # last grid block is partial

    def kernel(p_ref, t_ref, g_ref, o_ref):
        p = p_ref[...].astype(jnp.float32)
        t = t_ref[...].astype(jnp.float32)
        g = g_ref[...].astype(jnp.float32)

        d = p - t
        vals = d * d * g                          # (row_tile, 128) f32, pure VPU

        if needs_mask:
            # Zero the block-padding rows of the (only) partial last block.
            # `rows` is static; for full blocks valid >= row_tile so the mask
            # is all-true and folds into cheap VPU selects.
            row_ids = jax.lax.broadcasted_iota(jnp.int32, vals.shape, 0)
            valid = rows - pl.program_id(0) * row_tile
            vals = jnp.where(row_ids < valid, vals, 0.0)

        if row_tile % 8 == 0:
            # (k, 8, 128) view matches the native f32 (8,128) tiling -> free
            # reshape; the axis-0 reduce is plain vreg adds on the VPU (no
            # per-vreg 128-lane XLU reduction).  Store the (8,128) partial
            # lane-dense; the wrapper finishes the sum.
            o_ref[...] = jnp.sum(vals.reshape(row_tile // 8, 8, 128), axis=0)
        else:
            # Tiny full-dim tile (rows < 8): one small sublane reduce, placed
            # in sublane 0 of the output tile, zeros elsewhere.
            psum = jnp.sum(vals, axis=0, keepdims=True)            # (1, 128)
            sub_ids = jax.lax.broadcasted_iota(jnp.int32, (8, 128), 0)
            o_ref[...] = jnp.where(sub_ids == 0,
                                   jnp.broadcast_to(psum, (8, 128)), 0.0)

    return kernel


def mean_square_multiply_weight_loss(
    pred,
    target,
    G,
    *,
    target_block_elems=512 * 1024,        # ~2 MiB f32-equivalent per input/step
    min_grid=4,                           # aim for >= 4 pipelined grid steps
    vmem_limit_bytes=40 * 1024 * 1024,    # > v5e 16 MiB default, << v7x 64 MiB
):
    """Pallas equivalent of MeanSquareMultiplyWeightLoss.forward.

    Returns a float32 scalar: mean over all elements of (pred - target)**2 * G.
    """
    assert pred.shape == target.shape == G.shape
    n = math.prod(pred.shape)
    assert n > 0, "empty input"

    cols = 128
    p = pred.reshape(-1)
    t = target.reshape(-1)
    g = G.reshape(-1)

    # Pad only when n is not a multiple of 128 (never up to a full tile);
    # zero pred/target/G contributes 0 to the sum.
    pad = (-n) % cols
    if pad:
        p = jnp.pad(p, (0, pad))
        t = jnp.pad(t, (0, pad))
        g = jnp.pad(g, (0, pad))
    rows = (n + pad) // cols

    itemsizes = [jnp.dtype(x.dtype).itemsize for x in (pred, target, G)]
    sub = max(8, 32 // max(1, min(itemsizes)))   # sublane multiple: f32 8, bf16 16, i8 32

    # --- row-tile selection --------------------------------------------------
    if rows < sub:
        row_tile = rows                           # block == full array dim (tiny)
    else:
        cap = max(sub, (target_block_elems // cols // sub) * sub)
        want = _round_up(_cdiv(rows, min_grid), sub)
        row_tile = max(sub, min(cap, want, (rows // sub) * sub))
        num_tiles = _cdiv(rows, row_tile)
        if num_tiles > 1 and num_tiles % 2 == 1:
            # Prefer an even step count so v7x's two TensorCores stay balanced.
            rt2 = _round_up(_cdiv(rows, num_tiles + 1), sub)
            row_tile = max(sub, min(rt2, (rows // sub) * sub))
    num_tiles = _cdiv(rows, row_tile)

    p2 = p.reshape(rows, cols)
    t2 = t.reshape(rows, cols)
    g2 = g.reshape(rows, cols)

    # --- pallas call ----------------------------------------------------------
    kernel = _make_wmse_kernel(row_tile, rows, num_tiles)
    in_spec = pl.BlockSpec((row_tile, cols), lambda i: (i, 0))
    out_spec = pl.BlockSpec((8, 128), lambda i: (i, 0))

    partials = pl.pallas_call(
        kernel,
        out_shape=jax.ShapeDtypeStruct((num_tiles * 8, 128), jnp.float32),
        grid=(num_tiles,),
        in_specs=[in_spec, in_spec, in_spec],
        out_specs=out_spec,
        compiler_params=pltpu.CompilerParams(
            dimension_semantics=("parallel",),
            vmem_limit_bytes=vmem_limit_bytes,
        ),
    )(p2, t2, g2)

    # One (8,128) partial per tile; finish the tiny sum + single divide in JAX.
    return jnp.sum(partials) / jnp.float32(n)


def _reference(pred, target, G):
    p = pred.astype(jnp.float32)
    t = target.astype(jnp.float32)
    g = G.astype(jnp.float32)
    return jnp.mean((p - t) ** 2 * g)


if __name__ == "__main__":
    key = jax.random.PRNGKey(0)

    def _check(idx, shape, dtype=jnp.float32, **kwargs):
        k1, k2, k3 = jax.random.split(jax.random.fold_in(key, idx), 3)
        pred = jax.random.normal(k1, shape, dtype=jnp.float32).astype(dtype)
        target = jax.random.normal(k2, shape, dtype=jnp.float32).astype(dtype)
        G = jax.random.uniform(k3, shape, dtype=jnp.float32).astype(dtype)
        out = jax.block_until_ready(
            mean_square_multiply_weight_loss(pred, target, G, **kwargs))
        ref = _reference(pred, target, G)
        assert out.shape == (), out.shape
        assert jnp.allclose(out, ref, atol=1e-5, rtol=1e-5), (shape, out, ref)

    # main shape implied by the forward: pred/target/G all (2, 4, 16, 16)
    _check(0, (2, 4, 16, 16))        # rows=16 -> 2 even tiles, no pad, no mask
    _check(1, (3, 250))              # ragged n -> <128-elem pad, tiny full-dim tile
    _check(2, (16, 256))             # rows=32 -> 4 pipelined tiles
    _check(3, (5000, 128))           # partial last tile -> in-kernel row mask
    _check(4, (2, 4, 16, 16), dtype=jnp.bfloat16)   # narrow-dtype upcast path

    print("KERNEL_OK")
</pallas_src>

<mosaic_0001>
module attributes {stable_mosaic.version = 11 : i64} {
  func.func @kernel(%arg0: i32, %arg1: memref<8x128xf32, #tpu.memory_space<vmem>>, %arg2: memref<8x128xf32, #tpu.memory_space<vmem>>, %arg3: memref<8x128xf32, #tpu.memory_space<vmem>>, %arg4: memref<8x128xf32, #tpu.memory_space<vmem>>) attributes {dimension_semantics = [#tpu.dimension_semantics<parallel>], iteration_bounds = array<i64: 2>, scalar_prefetch = 0 : i64, scratch_operands = 0 : i64, tpu.core_type = #tpu.core_type<tc>, window_params = [{transform_indices = @transform_0, window_bounds = array<i64: 8, 128>}, {transform_indices = @transform_1, window_bounds = array<i64: 8, 128>}, {transform_indices = @transform_2, window_bounds = array<i64: 8, 128>}, {transform_indices = @transform_3, window_bounds = array<i64: 8, 128>}]} {
    %c0 = arith.constant 0 : index
    %c0_0 = arith.constant 0 : index
    %0 = vector.load %arg1[%c0, %c0_0] : memref<8x128xf32, #tpu.memory_space<vmem>>, vector<8x128xf32>
    %c0_1 = arith.constant 0 : index
    %c0_2 = arith.constant 0 : index
    %1 = vector.load %arg2[%c0_1, %c0_2] : memref<8x128xf32, #tpu.memory_space<vmem>>, vector<8x128xf32>
    %c0_3 = arith.constant 0 : index
    %c0_4 = arith.constant 0 : index
    %2 = vector.load %arg3[%c0_3, %c0_4] : memref<8x128xf32, #tpu.memory_space<vmem>>, vector<8x128xf32>
    %3 = arith.subf %0, %1 : vector<8x128xf32>
    %4 = arith.mulf %3, %3 : vector<8x128xf32>
    %5 = arith.mulf %4, %2 : vector<8x128xf32>
    %6 = vector.shape_cast %5 : vector<8x128xf32> to vector<1x8x128xf32>
    %cst = arith.constant dense<0.000000e+00> : vector<8x128xf32>
    %7 = vector.multi_reduction <add>, %6, %cst [0] : vector<1x8x128xf32> to vector<8x128xf32>
    %c0_5 = arith.constant 0 : index
    %c0_6 = arith.constant 0 : index
    %8 = vector.load %arg4[%c0_5, %c0_6] : memref<8x128xf32, #tpu.memory_space<vmem>>, vector<8x128xf32>
    tpu.vector_store %arg4[%c0_5, %c0_6], %7 {strides = array<i32>} : memref<8x128xf32, #tpu.memory_space<vmem>>, vector<8x128xf32>,
    return
  }
  func.func @transform_0(%arg0: i32) -> (i32, i32) {
    %c0_i32 = arith.constant 0 : i32
    %c0_i32_0 = arith.constant 0 : i32
    return %arg0, %c0_i32 : i32, i32
  }
  func.func @transform_1(%arg0: i32) -> (i32, i32) {
    %c0_i32 = arith.constant 0 : i32
    %c0_i32_0 = arith.constant 0 : i32
    return %arg0, %c0_i32 : i32, i32
  }
  func.func @transform_2(%arg0: i32) -> (i32, i32) {
    %c0_i32 = arith.constant 0 : i32
    %c0_i32_0 = arith.constant 0 : i32
    return %arg0, %c0_i32 : i32, i32
  }
  func.func @transform_3(%arg0: i32) -> (i32, i32) {
    %c0_i32 = arith.constant 0 : i32
    %c0_i32_0 = arith.constant 0 : i32
    return %arg0, %c0_i32 : i32, i32
  }
}

</mosaic_0001>

<bundles_post_ra>
// kernel: tpu_custom_call.1
= control target key start
LH: loop header
LB: loop body
LE: loop exit
PB: predicated region body
PF: predicated region fallthrough
CT: control target
= control target key end

     0   :  { %s881_s0 = inlined_call_operand.hbm [shape: f32[16,128], index: 0, kind: input, shape index: {}]   ;;  %s882_s1 = inlined_call_operand.hbm [shape: f32[16,128], index: 1, kind: input, shape index: {}]   ;;  %s883_s2 = inlined_call_operand.hbm [shape: f32[16,128], index: 2, kind: input, shape index: {}]   ;;  %s884_s3 = inlined_call_operand.hbm [shape: f32[16,128], index: 3, kind: output, shape index: {}]  }
   0x1   :  { %889 = sst [smem:[#allocation12_spill]] %s882_s1 }
   0x2   :  { %8 = vsyncpa [#allocation3], 0 }
   0x3   :  { %10 = vsyncpa [#allocation3 + $0x1], 0 }
   0x4   :  { %11 = vsyncpa [#allocation6], 0 }
   0x5   :  { %13 = vsyncpa [#allocation6 + $0x1], 0 }
   0x6   :  { %14 = vsyncpa [#allocation4], 0 }
   0x7   :  { %16 = vsyncpa [#allocation4 + $0x1], 0  ;;  %s652_s12 = smov 0   ;;  %s654_s13 = smov 0  }
   0x8   :  { %s656_s14 = smov 0   ;;  %s658_s15 = smov 0  }
   0x9 LB: > { %s673_s16 = sadd.s32 4294967295, %s626_s15   ;;  %s392_s17 = sadd.s32 4294967294, %s626_s15   ;;  %s626_s15 = sphi %s658_s15, %s908_s15   ;;  %s622_s14 = sphi %s656_s14, %s907_s14   ;;  %s618_s13 = sphi %s654_s13, %s906_s13   ;;  %s614_s12 = sphi %s652_s12, %s905_s12  }
   0xa   : > { %s677_s18 = sadd.s32 1, %s626_s15   ;;  %s29_s19 = sadd.s32 1, %s622_s14 }
   0xb   : > { %s26_s20 = ssub.s32 %s626_s15, %s677_s18  ;;  %p36_p0 = scmp.ne.s32.totalorder %s622_s14, %s618_s13 }
   0xc   : > { %p27_p1 = scmp.eq.s32.totalorder %s26_s20, 0  ;;  %p37_p2 = scmp.eq.s32.totalorder %s626_s15, 0 }
   0xd   : > { %p42_p3 = scmp.ne.s32.totalorder %s618_s13, %s614_s12  ;;  %p43_p4 = scmp.eq.s32.totalorder %s673_s16, 0 }
   0xe   : > { %s689_s21 = scalar_select %p27_p1, %s622_s14, %s29_s19  }
   0xf   : > { %p38_p5 = por %p37_p2, %p36_p0  ;;  %p691_p6 = por %p43_p4, %p42_p3 }
  0x10   : > { %p118_p7 = scmp.eq.s32.totalorder %s673_s16, 1  ;;  %p124_p8 = scmp.eq.s32.totalorder %s392_s17, 1 }
  0x11   : > { %s890_s22 = scalar_select %p691_p6, 1, 0 }
  0x12   : > { %p432_p10 = scmp.lt.s32.totalorder %s626_s15, 2  ;;  %p698_p11 = por %p118_p7, %p36_p0 }
  0x13   : > { %p702_p12 = por %p124_p8, %p42_p3  ;;  %s144_s25 = sand.u32 1, %s622_s14  }
  0x14   : > { %s891_s23 = scalar_select %p698_p11, 1, 0 }
  0x15   : > { %s892_s24 = scalar_select %p702_p12, 1, 0 }
  0x16   : > { %s708_s26 = sshll.u32 %s626_s15, 7  ;;  %s712_s27 = sshll.u32 %s144_s25, 3 }
  0x17   : > { %p714_p13 = pnand %p432_p10, %p38_p5  ;;  %s162_s29 = sand.u32 1, %s626_s15  }
  0x18   : > { %s894_s1 = sld [smem:[#allocation12_spill]]  ;;  %s166_s6 = scalar_lea.vmem [#allocation5], %s712_s27 }
  0x19   : > { %s893_s28 = scalar_select %p714_p13, 1, 0 }
  0x1a   : > { %s173_s7 = sshll.u32 %s166_s6, 4  ;;  %s729_s8 = scalar_lea.sflag [#allocation6], %s162_s29  ;;  %s726_s7 = int_to_ptr.vmem [resolvable:$true] %s173_s7 }
  0x1b   : > { %p735_p2 = pneg %p714_p13 }
  0x1e   : > { %s723_s5 = scalar_lea.hbm %s894_s1, %s708_s26  ;;  %s471_s19 = scalar_lea.hbm %s894_s1, 256 }
  0x1f   : > { %s466_s9 = scalar_lea.hbm %s723_s5, 128  ;;  %p472_p5 = scmp.lt.u32.totalorder %s723_s5, %s894_s1 }
  0x20   : > { %p467_p1 = scmp.ne.s32.totalorder %s723_s5, %s466_s9  ;;  %p473_p7 = scmp.lt.u32.totalorder %s471_s19, %s466_s9 }
  0x21   : > { %p475_p10 = scmp.lt.u32.totalorder %s466_s9, %s723_s5 }
  0x22   : > { %p469_p3 = pnand %p735_p2, %p467_p1  ;;  %p474_p8 = por %p473_p7, %p472_p5 }
  0x24   : > { %p470_p4 = pneg %p469_p3  ;;  %p476_p9 = por %p475_p10, %p474_p8 }
  0x26   : > { %p477_p0 = pnand %p476_p9, %p470_p4 }
  0x28   : > { %480 = shalt.err (!%p477_p0)
}
  0x29   : > { %s481_s29 = scalar_lea.vmem %s726_s7, 128  ;;  %s628_s4 = smov [#allocation5]  }
  0x2a   : > { %p482_p1 = scmp.ne.s32.totalorder %s726_s7, %s481_s29  ;;  %s486_s6 = sshll.u32 %s628_s4, 4  ;;  %s487_s6 = int_to_ptr.vmem [resolvable:$false] %s486_s6 }
  0x2b   : > { %s488_s11 = scalar_lea.vmem %s487_s6, 256  ;;  %p489_p11 = scmp.lt.s32.totalorder %s726_s7, %s487_s6 }
  0x2c   : > { %p484_p3 = pnand %p482_p1, %p735_p2  ;;  %p490_p6 = scmp.lt.s32.totalorder %s488_s11, %s481_s29 }
  0x2e   : > { %p485_p12 = pneg %p484_p3  ;;  %p491_p5 = por %p490_p6, %p489_p11 }
  0x30   : > { %p492_p7 = pnand %p491_p5, %p485_p12 }
  0x32   : > { %495 = shalt.err (!%p492_p7)
}
  0x33   : > { %424 = dma.hbm_to_vmem [thread:$0]  (!%p714_p13), %s723_s5, 128, %s726_s7, %s729_s8  }
  0x34   : > { %p196_p9 = scmp.lt.s32.totalorder %s626_s15, 3  ;;  %s764_s19 = scalar_lea.hbm %s881_s0, %s708_s26 }
  0x35   : > { %p896_p6 = scmp.ge.s32.totalorder %s626_s15, 1  ;;  %s148_s30 = scalar_lea.vmem [#allocation2], %s712_s27 }
  0x36   : > { %s155_s29 = sshll.u32 %s148_s30, 4  ;;  %s145_s5 = scalar_lea.sflag [#allocation3], %s144_s25  ;;  %s156_s29 = int_to_ptr.vmem [resolvable:$true] %s155_s29 }
  0x37   : > { %p768_p11 = pnand %p896_p6, %p196_p9  ;;  %s496_s7 = scalar_lea.hbm %s764_s19, 128 }
  0x38   : > { %p497_p12 = scmp.ne.s32.totalorder %s764_s19, %s496_s7  ;;  %s501_s11 = scalar_lea.hbm %s881_s0, 256 }
  0x39   : > { %s897_s20 = scalar_select %p768_p11, 1, 0 }
  0x3a   : > { %p499_p0 = pnand %p497_p12, %p735_p2  ;;  %p502_p8 = scmp.lt.u32.totalorder %s764_s19, %s881_s0 }
  0x3b   : > { %p503_p10 = scmp.lt.u32.totalorder %s501_s11, %s496_s7  ;;  %p505_p3 = scmp.lt.u32.totalorder %s496_s7, %s764_s19 }
  0x3c   : > { %p500_p4 = pneg %p499_p0 }
  0x3d   : > { %p504_p1 = por %p503_p10, %p502_p8 }
  0x3f   : > { %p506_p5 = por %p505_p3, %p504_p1 }
  0x41   : > { %p507_p7 = pnand %p506_p5, %p500_p4 }
  0x43   : > { %510 = shalt.err (!%p507_p7)
}
  0x44   : > { %s511_s25 = scalar_lea.vmem %s156_s29, 128  ;;  %s629_s30 = smov [#allocation2]  }
  0x45   : > { %p512_p9 = scmp.ne.s32.totalorder %s156_s29, %s511_s25  ;;  %s516_s1 = sshll.u32 %s629_s30, 4  ;;  %s517_s1 = int_to_ptr.vmem [resolvable:$false] %s516_s1 }
  0x46   : > { %s518_s4 = scalar_lea.vmem %s517_s1, 256  ;;  %p519_p0 = scmp.lt.s32.totalorder %s156_s29, %s517_s1 }
  0x47   : > { %p514_p6 = pnand %p512_p9, %p735_p2  ;;  %p520_p11 = scmp.lt.s32.totalorder %s518_s4, %s511_s25 }
  0x49   : > { %p515_p12 = pneg %p514_p6  ;;  %p521_p13 = por %p520_p11, %p519_p0 }
  0x4b   : > { %p522_p8 = pnand %p521_p13, %p515_p12 }
  0x4d   : > { %525 = shalt.err (!%p522_p8)
}
  0x4e   : > { %p898_p10 = scmp.ne.s32.totalorder %s893_s28, 0  ;;  %s796_s11 = scalar_lea.hbm %s883_s2, %s708_s26 }
  0x4f   : > { %s184_s1 = scalar_lea.vmem [#allocation7], %s712_s27  ;;  %s526_s17 = scalar_lea.hbm %s796_s11, 128 }
  0x50   : > { %421 = dma.hbm_to_vmem [thread:$0]  (!%p898_p10), %s764_s19, 128, %s156_s29, %s145_s5  }
  0x51   : > { %s191_s9 = sshll.u32 %s184_s1, 4  ;;  %p527_p13 = scmp.ne.s32.totalorder %s796_s11, %s526_s17  ;;  %s192_s9 = int_to_ptr.vmem [resolvable:$true] %s191_s9 }
  0x52   : > { %s531_s19 = scalar_lea.hbm %s883_s2, 256  ;;  %p532_p1 = scmp.lt.u32.totalorder %s796_s11, %s883_s2 }
  0x53   : > { %p529_p11 = pnand %p527_p13, %p735_p2  ;;  %p533_p3 = scmp.lt.u32.totalorder %s531_s19, %s526_s17 }
  0x54   : > { %p535_p7 = scmp.lt.u32.totalorder %s526_s17, %s796_s11 }
  0x55   : > { %p530_p4 = pneg %p529_p11  ;;  %p534_p5 = por %p533_p3, %p532_p1 }
  0x57   : > { %p536_p9 = por %p535_p7, %p534_p5 }
  0x59   : > { %p537_p6 = pnand %p536_p9, %p530_p4 }
  0x5b   : > { %540 = shalt.err (!%p537_p6)
}
  0x5c   : > { %s541_s26 = scalar_lea.vmem %s192_s9, 128  ;;  %s630_s27 = smov [#allocation7]  }
  0x5d   : > { %p542_p12 = scmp.ne.s32.totalorder %s192_s9, %s541_s26  ;;  %s546_s4 = sshll.u32 %s630_s27, 4  ;;  %s547_s4 = int_to_ptr.vmem [resolvable:$false] %s546_s4 }
  0x5e   : > { %s548_s7 = scalar_lea.vmem %s547_s4, 256  ;;  %p549_p13 = scmp.lt.s32.totalorder %s192_s9, %s547_s4 }
  0x5f   : > { %p544_p0 = pnand %p542_p12, %p735_p2  ;;  %p550_p11 = scmp.lt.s32.totalorder %s548_s7, %s541_s26 }
  0x61   : > { %p545_p8 = pneg %p544_p0  ;;  %p551_p10 = por %p550_p11, %p549_p13 }
  0x63   : > { %p552_p1 = pnand %p551_p10, %p545_p8 }
  0x65   : > { %555 = shalt.err (!%p552_p1)
}
  0x66   : > { %p899_p3 = scmp.ne.s32.totalorder %s893_s28, 0  ;;  %p900_p4 = scmp.ne.s32.totalorder %s897_s20, 0 }
  0x67   : > { %s820_s10 = sand.u32 (!%p900_p4), 1, %s618_s13   ;;  %p901_p2 = scmp.ne.s32.totalorder (!%p900_p4), %s890_s22, 0 }
  0x68   : > { %427 = dma.hbm_to_vmem [thread:$0]  (!%p899_p3), %s796_s11, 128, %s192_s9, %s729_s8  }
  0x69   : > { %200 = sbr.rel (%p900_p4) target bundleno = 142 (0x8e), region = 32  ;;  %s402_s6 = sshll.u32 (!%p900_p4), %s820_s10, 3 }
  0x6a   : > { %s203_s1 = scalar_lea.sflag (!%p900_p4), [#allocation3], %s820_s10  ;;  %s206_s17 = scalar_lea.vmem (!%p900_p4), [#allocation2], %s402_s6 }
  0x70   : > { %601 = dma.done.wait (%p901_p2), %s203_s1, 128  }
  0x71   : > { %603 = vsyncadd (%p901_p2), %s203_s1, 4294967168  ;;  %s211_s28 = sand.u32 1, %s673_s16   ;;  %s215_s20 = scalar_lea.vmem [#allocation5], %s402_s6 }
  0x72   : > { %s212_s8 = scalar_lea.sflag [#allocation6], %s211_s28 }
  0x73   : > { %605 = dma.done.wait (%p901_p2), %s212_s8, 256  }
  0x74   : > { %607 = vsyncadd (%p901_p2), %s212_s8, 4294967040  ;;  %v257_v0 = vld [vmem:[%s206_s17] sm:$0xff]  ;;  %v258_v1 = vld [vmem:[%s215_s20] sm:$0xff]  ;;  %s224_s11 = scalar_lea.vmem [#allocation7], %s402_s6  ;;  %s256_s9 = scalar_lea.vmem [#allocation8], %s402_s6 }
  0x75   : > { %v260_v2 = vsub.f32 %v257_v0, %v258_v1  ;;  %v259_v3 = vld [vmem:[%s224_s11] sm:$0xff]  ;;  %s279_s25 = sshll.u32 %s256_s9, 4  ;;  %s407_s30 = sshll.u32 %s673_s16, 7  ;;  %s834_s25 = int_to_ptr.vmem [resolvable:$true] %s279_s25 }
  0x76   : > { %s839_s22 = scalar_lea.hbm %s884_s3, %s407_s30  ;;  %s266_s5 = scalar_lea.sflag [#allocation4], %s820_s10 }
  0x77   : > { %v261_v4 = vmul.f32 %v260_v2, %v260_v2  ;;  %s556_s26 = scalar_lea.vmem %s834_s25, 128  ;;  %p902_p5 = scmp.ne.s32.totalorder %s891_s23, 0 }
  0x78   : > { %p557_p10 = scmp.ne.s32.totalorder %s834_s25, %s556_s26  ;;  %s631_s16 = smov [#allocation8]  }
  0x79   : > { %v262_v5 = vmul.f32 %v261_v4, %v259_v3  ;;  %s560_s27 = sshll.u32 %s631_s16, 4  ;;  %s561_s27 = int_to_ptr.vmem [resolvable:$false] %s560_s27 }
  0x7a   : > { %p558_p7 = pnand %p557_p10, %p902_p5  ;;  %s562_s4 = scalar_lea.vmem %s561_s27, 256 }
  0x7b   : > { %264 = vst [vmem:[%s256_s9] sm:$0xff] %v262_v5  ;;  %p563_p6 = scmp.lt.s32.totalorder %s834_s25, %s561_s27  ;;  %p564_p12 = scmp.lt.s32.totalorder %s562_s4, %s556_s26 }
  0x7c   : > { %p559_p9 = pneg %p558_p7 }
  0x7d   : > { %p565_p0 = por %p564_p12, %p563_p6 }
  0x7f   : > { %p566_p8 = pnand %p565_p0, %p559_p9 }
  0x81   : > { %569 = shalt.err (!%p566_p8)
}
  0x82   : > { %s570_s7 = scalar_lea.hbm %s839_s22, 128  ;;  %s574_s1 = scalar_lea.hbm %s884_s3, 256 }
  0x83   : > { %p571_p13 = scmp.ne.s32.totalorder %s839_s22, %s570_s7  ;;  %p575_p3 = scmp.lt.u32.totalorder %s839_s22, %s884_s3 }
  0x84   : > { %p576_p4 = scmp.lt.u32.totalorder %s574_s1, %s570_s7  ;;  %p578_p10 = scmp.lt.u32.totalorder %s570_s7, %s839_s22 }
  0x85   : > { %p572_p11 = pnand %p571_p13, %p902_p5 }
  0x86   : > { %p577_p2 = por %p576_p4, %p575_p3 }
  0x87   : > { %p573_p1 = pneg %p572_p11 }
  0x88   : > { %p579_p7 = por %p578_p10, %p577_p2 }
  0x8a   : > { %p580_p9 = pnand %p579_p7, %p573_p1 }
  0x8c   : > { %583 = shalt.err (!%p580_p9)
}
  0x8d   : > { %416 = dma.vmem_to_hbm [thread:$0]  (%p902_p5), %s834_s25, 128, %s839_s22, %s266_s5  }
  0x8e PF: > { %s291_s8 = sand.u32 1, %s614_s12   ;;  %p903_p6 = scmp.ne.s32.totalorder %s892_s24, 0 }
  0x8f   : > { %p904_p12 = scmp.ge.s32.totalorder %s626_s15, 2  ;;  %s292_s20 = scalar_lea.sflag [#allocation4], %s291_s8 }
  0x91   : > { %p429_p0 = pnand %p904_p12, %p903_p6 }
  0x93   : > { %609 = dma.done.wait (!%p429_p0), %s292_s20, 128  }
  0x94   : > { %611 = vsyncadd (!%p429_p0), %s292_s20, 4294967168  ;;  %p19_p8 = scmp.ge.s32.totalorder %s677_s18, 4   ;;  %s905_s12 = smov %s618_s13 }
  0x95   : > { %s906_s13 = smov %s622_s14  ;;  %s907_s14 = smov %s689_s21 }
  0x96   : > { %s908_s15 = smov %s677_s18  ;;  %21 = sbr.rel (!%p19_p8) target bundleno = 9 (0x9), region = 101 }
  0x9d   :  { %297 = vsyncpa [#allocation3], 1 }
  0x9e   :  { %299 = vsyncpa [#allocation3 + $0x1], 1 }
  0x9f   :  { %300 = vsyncpa [#allocation6], 1 }
  0xa0   :  { %302 = vsyncpa [#allocation6 + $0x1], 1 }
  0xa1   :  { %303 = vsyncpa [#allocation4], 1 }
  0xa2   :  { %305 = vsyncpa [#allocation4 + $0x1], 1 }

</bundles_post_ra>
